<compile_context>
chip_gen: v7x
topology: tpu7x:2x2x1
jax: 0.10.0
libtpu: 0.0.40
codegen_flags: <defaults>
</compile_context>

<pallas_src>
import jax
import jax.numpy as jnp
from jax.experimental import pallas as pl
from jax.experimental.pallas import tpu as pltpu

BN_EPS = 1e-5


def _round_up(x, m):
    return (x + m - 1) // m * m


def _decoder_kernel(x_ref,
                    w1_ref, b1_ref,
                    w2_ref, b2_ref,
                    w3_ref, b3_ref,
                    out_ref,
                    h_ref):
    # The hidden activation depends only on the batch tile (grid axis 0).
    # Compute it once per batch tile (first output-feature tile) and reuse the
    # VMEM-resident result for all remaining output-feature tiles.
    @pl.when(pl.program_id(1) == 0)
    def _():
        # decoder_input: Linear(latent -> h1)   (bf16 operands, f32 accumulate)
        r1 = jnp.dot(x_ref[...], w1_ref[...],
                     preferred_element_type=jnp.float32) + b1_ref[...]
        # decoder block: Linear(h1 -> h2) with BatchNorm (eval) pre-folded into
        # w2/b2 on the host, then ReLU.  Dropout is identity at inference.
        # TODO(synk): training-mode dropout / batch-statistics BN not implemented.
        r2 = jnp.dot(r1.astype(jnp.bfloat16), w2_ref[...],
                     preferred_element_type=jnp.float32) + b2_ref[...]
        h_ref[...] = jnp.maximum(r2, 0.0).astype(jnp.bfloat16)

    # decoder_output: Linear(h2 -> input_dim), streamed over output tiles.
    out = jnp.dot(h_ref[...], w3_ref[...],
                  preferred_element_type=jnp.float32) + b3_ref[...]
    out_ref[...] = out.astype(out_ref.dtype)


def gene_expression_decoder(embedding, params, *, block_b=256, tile_n=1024):
    """Fused forward pass. embedding: (B, latent_dim) float32."""
    w1, b1, w2, b2, gamma, beta, mean, var, w3, b3 = params
    B, L = embedding.shape
    H1 = w1.shape[1]
    H2 = w2.shape[1]
    OUT = w3.shape[1]

    # ---- Fold BatchNorm (eval) into the second Linear layer (host-side) ----
    scale = gamma * jax.lax.rsqrt(var + BN_EPS)          # (1, H2)
    w2f = w2 * scale
    b2f = (b2 - mean) * scale + beta

    # ---- Lane-dense padding (multiples of 128) + batch/output tiling ----
    Lp = _round_up(L, 128)
    H1p = _round_up(H1, 128)
    H2p = _round_up(H2, 128)
    bb = min(block_b, _round_up(B, 8))                   # whole batch if small
    Bp = _round_up(B, bb)
    tn = min(tile_n, _round_up(OUT, 128))                # output-feature tile
    OUTp = _round_up(OUT, tn)

    def pad2(a, rows, cols):
        return jnp.pad(a, ((0, rows - a.shape[0]), (0, cols - a.shape[1])))

    # bf16 MXU operands, f32 biases (added to the f32 accumulator).
    x_p = pad2(embedding, Bp, Lp).astype(jnp.bfloat16)
    w1_p = pad2(w1, Lp, H1p).astype(jnp.bfloat16)
    w2_p = pad2(w2f, H1p, H2p).astype(jnp.bfloat16)
    w3_p = pad2(w3, H2p, OUTp).astype(jnp.bfloat16)
    b1_p = pad2(b1, 1, H1p).astype(jnp.float32)
    b2_p = pad2(b2f, 1, H2p).astype(jnp.float32)
    b3_p = pad2(b3, 1, OUTp).astype(jnp.float32)

    grid = (Bp // bb, OUTp // tn)

    invariant = lambda i, j: (0, 0)  # noqa: E731

    # Advisory cost estimate for the XLA scheduler.
    flops = int(2 * Bp * (Lp * H1p + H1p * H2p + H2p * OUTp))
    bytes_accessed = int(
        x_p.size * 2 + w1_p.size * 2 + w2_p.size * 2 + w3_p.size * 2
        + (b1_p.size + b2_p.size + b3_p.size) * 4 + Bp * OUTp * 4)

    # Rough per-step VMEM footprint (bytes): resident weights + double-buffered
    # streamed tiles + scratch.  Give headroom but stay under v7x's 64 MiB.
    vmem_needed = (
        2 * bb * Lp * 2                   # x tile (double-buffered, bf16)
        + 2 * (Lp * H1p + H1p * H2p) * 2  # W1, W2 (bf16, grid-invariant)
        + 2 * H2p * tn * 2                # streamed W3 tile (double-buffered)
        + 2 * (H1p + H2p + 2 * tn) * 4    # biases (f32)
        + bb * H2p * 2                    # hidden-activation scratch (bf16)
        + 2 * bb * tn * 4)                # output tile (double-buffered, f32)
    vmem_limit = int(min(max(2 * vmem_needed, 32 * 2**20), 56 * 2**20))

    out_p = pl.pallas_call(
        _decoder_kernel,
        out_shape=jax.ShapeDtypeStruct((Bp, OUTp), jnp.float32),
        grid_spec=pltpu.PrefetchScalarGridSpec(
            num_scalar_prefetch=0,
            grid=grid,
            in_specs=[
                pl.BlockSpec((bb, Lp), lambda i, j: (i, 0)),   # embedding tile
                pl.BlockSpec((Lp, H1p), invariant),            # W1
                pl.BlockSpec((1, H1p), invariant),             # b1
                pl.BlockSpec((H1p, H2p), invariant),           # W2 (BN folded)
                pl.BlockSpec((1, H2p), invariant),             # b2 (BN folded)
                pl.BlockSpec((H2p, tn), lambda i, j: (0, j)),  # W3 N-tile
                pl.BlockSpec((1, tn), lambda i, j: (0, j)),    # b3 N-tile
            ],
            out_specs=pl.BlockSpec((bb, tn), lambda i, j: (i, j)),
            scratch_shapes=[pltpu.VMEM((bb, H2p), jnp.bfloat16)],
        ),
        compiler_params=pltpu.CompilerParams(
            # Axis 1 must be "arbitrary": hidden-activation scratch is written
            # at j == 0 and reused across j.  Batch axis is megacore-parallel.
            dimension_semantics=("parallel", "arbitrary"),
            vmem_limit_bytes=vmem_limit),
        cost_estimate=pl.CostEstimate(
            flops=flops, transcendentals=0, bytes_accessed=bytes_accessed),
    )(x_p, w1_p, b1_p, w2_p, b2_p, w3_p, b3_p)

    return out_p[:B, :OUT]


def init_params(key, input_dim, latent_dim, h_dims):
    """Deterministic synthetic parameters matching the module's shapes."""
    h1 = h_dims[-1]
    h2 = h_dims[-2]
    ks = jax.random.split(key, 8)

    def lin(kw, kb, fan_in, fan_out):
        w = (jax.random.normal(kw, (fan_in, fan_out), jnp.float32)
             / jnp.sqrt(jnp.float32(fan_in)))
        b = 0.01 * jax.random.normal(kb, (1, fan_out), jnp.float32)
        return w, b

    w1, b1 = lin(ks[0], ks[1], latent_dim, h1)
    w2, b2 = lin(ks[2], ks[3], h1, h2)
    w3, b3 = lin(ks[4], ks[5], h2, input_dim)

    gamma = 1.0 + 0.1 * jax.random.normal(ks[6], (1, h2), jnp.float32)
    beta = 0.05 * jax.random.normal(ks[7], (1, h2), jnp.float32)
    mean = 0.1 * jnp.sin(jnp.arange(h2, dtype=jnp.float32)).reshape(1, h2)
    var = 1.0 + 0.1 * jnp.cos(jnp.arange(h2, dtype=jnp.float32)).reshape(1, h2) ** 2

    return (w1, b1, w2, b2, gamma, beta, mean, var, w3, b3)


def reference_forward_f32(x, params):
    """Eval-mode module semantics in pure f32."""
    w1, b1, w2, b2, gamma, beta, mean, var, w3, b3 = params
    r1 = x @ w1 + b1
    r2 = r1 @ w2 + b2
    r2 = (r2 - mean) / jnp.sqrt(var + BN_EPS) * gamma + beta
    r2 = jnp.maximum(r2, 0.0)
    return r2 @ w3 + b3


def reference_forward_bf16(x, params):
    """Pure-JAX reference mimicking the kernel's dtype strategy (bf16 operands,
    f32 accumulation, BN folded into the second linear)."""
    w1, b1, w2, b2, gamma, beta, mean, var, w3, b3 = params
    scale = gamma * jax.lax.rsqrt(var + BN_EPS)
    w2f = (w2 * scale).astype(jnp.bfloat16)
    b2f = (b2 - mean) * scale + beta
    r1 = jnp.dot(x.astype(jnp.bfloat16), w1.astype(jnp.bfloat16),
                 preferred_element_type=jnp.float32) + b1
    r2 = jnp.dot(r1.astype(jnp.bfloat16), w2f,
                 preferred_element_type=jnp.float32) + b2f
    r2 = jnp.maximum(r2, 0.0).astype(jnp.bfloat16)
    return jnp.dot(r2, w3.astype(jnp.bfloat16),
                   preferred_element_type=jnp.float32) + b3


if __name__ == "__main__":
    # Small shapes consistent with the module's forward:
    #   batch=16, latent_dim=32, h_dims=[128, 64], input_dim=96
    #   -> Linear(32->64) ; Linear(64->128)+BN+ReLU+Dropout ; Linear(128->96)
    B, LATENT = 16, 32
    H_DIMS = [128, 64]
    INPUT_DIM = 96

    key = jax.random.PRNGKey(0)
    k_x, k_p = jax.random.split(key)
    embedding = jax.random.normal(k_x, (B, LATENT), jnp.float32)
    params = init_params(k_p, INPUT_DIM, LATENT, H_DIMS)

    decode = jax.jit(gene_expression_decoder)
    out = jax.block_until_ready(decode(embedding, params))

    assert out.shape == (B, INPUT_DIM)

    # Tight check against a reference using the same bf16/f32 strategy.
    ref_bf16 = reference_forward_bf16(embedding, params)
    assert jnp.allclose(out, ref_bf16, atol=5e-3, rtol=5e-3), \
        "mismatch vs bf16-mimic reference"

    # Loose semantic check against the full-precision eval-mode module.
    ref_f32 = reference_forward_f32(embedding, params)
    assert jnp.allclose(out, ref_f32, atol=5e-2, rtol=5e-2), \
        "mismatch vs f32 reference"

    print("KERNEL_OK")
</pallas_src>

<mosaic_0001>
module attributes {stable_mosaic.version = 11 : i64} {
  func.func @_decoder_kernel(%arg0: i32, %arg1: i32, %arg2: memref<16x128xbf16, #tpu.memory_space<vmem>>, %arg3: memref<128x128xbf16, #tpu.memory_space<vmem>>, %arg4: memref<1x128xf32, #tpu.memory_space<vmem>>, %arg5: memref<128x128xbf16, #tpu.memory_space<vmem>>, %arg6: memref<1x128xf32, #tpu.memory_space<vmem>>, %arg7: memref<128x128xbf16, #tpu.memory_space<vmem>>, %arg8: memref<1x128xf32, #tpu.memory_space<vmem>>, %arg9: memref<16x128xf32, #tpu.memory_space<vmem>>, %arg10: memref<16x128xbf16, #tpu.memory_space<vmem>>) attributes {dimension_semantics = [#tpu.dimension_semantics<parallel>, #tpu.dimension_semantics<arbitrary>], iteration_bounds = array<i64: 1, 1>, scalar_prefetch = 0 : i64, scratch_operands = 1 : i64, tpu.core_type = #tpu.core_type<tc>, window_params = [{transform_indices = @transform_0, window_bounds = array<i64: 16, 128>}, {pipeline_mode = #tpu.pipeline_mode<synchronous>, transform_indices = @transform_1, window_bounds = array<i64: 128, 128>}, {pipeline_mode = #tpu.pipeline_mode<synchronous>, transform_indices = @transform_2, window_bounds = array<i64: 1, 128>}, {pipeline_mode = #tpu.pipeline_mode<synchronous>, transform_indices = @transform_3, window_bounds = array<i64: 128, 128>}, {pipeline_mode = #tpu.pipeline_mode<synchronous>, transform_indices = @transform_4, window_bounds = array<i64: 1, 128>}, {transform_indices = @transform_5, window_bounds = array<i64: 128, 128>}, {transform_indices = @transform_6, window_bounds = array<i64: 1, 128>}, {transform_indices = @transform_7, window_bounds = array<i64: 16, 128>}]} {
    %c0_i32 = arith.constant 0 : i32
    %0 = arith.cmpi eq, %arg1, %c0_i32 : i32
    %1 = arith.extui %0 : i1 to i32
    %c0_i32_0 = arith.constant 0 : i32
    %2 = arith.cmpi ne, %1, %c0_i32_0 : i32
    scf.if %2 {
      %c0_8 = arith.constant 0 : index
      %c0_9 = arith.constant 0 : index
      %10 = vector.load %arg2[%c0_8, %c0_9] : memref<16x128xbf16, #tpu.memory_space<vmem>>, vector<16x128xbf16>
      %c0_10 = arith.constant 0 : index
      %c0_11 = arith.constant 0 : index
      %11 = vector.load %arg3[%c0_10, %c0_11] : memref<128x128xbf16, #tpu.memory_space<vmem>>, vector<128x128xbf16>
      %cst_12 = arith.constant dense<0.000000e+00> : vector<16x128xf32>
      %12 = tpu.matmul %10, %11, %cst_12 {dimension_numbers = #tpu.dot_dimension_numbers<[1], [0], [0], [1], [0, 0, 1, 1], [], []>} : vector<16x128xbf16>, vector<128x128xbf16>, vector<16x128xf32> -> vector<16x128xf32>
      %c0_13 = arith.constant 0 : index
      %c0_14 = arith.constant 0 : index
      %13 = vector.load %arg4[%c0_13, %c0_14] : memref<1x128xf32, #tpu.memory_space<vmem>>, vector<1x128xf32>
      %14 = vector.broadcast %13 : vector<1x128xf32> to vector<16x128xf32>
      %15 = arith.addf %12, %14 : vector<16x128xf32>
      %16 = arith.truncf %15 : vector<16x128xf32> to vector<16x128xbf16>
      %c0_15 = arith.constant 0 : index
      %c0_16 = arith.constant 0 : index
      %17 = vector.load %arg5[%c0_15, %c0_16] : memref<128x128xbf16, #tpu.memory_space<vmem>>, vector<128x128xbf16>
      %cst_17 = arith.constant dense<0.000000e+00> : vector<16x128xf32>
      %18 = tpu.matmul %16, %17, %cst_17 {dimension_numbers = #tpu.dot_dimension_numbers<[1], [0], [0], [1], [0, 0, 1, 1], [], []>} : vector<16x128xbf16>, vector<128x128xbf16>, vector<16x128xf32> -> vector<16x128xf32>
      %c0_18 = arith.constant 0 : index
      %c0_19 = arith.constant 0 : index
      %19 = vector.load %arg6[%c0_18, %c0_19] : memref<1x128xf32, #tpu.memory_space<vmem>>, vector<1x128xf32>
      %20 = vector.broadcast %19 : vector<1x128xf32> to vector<16x128xf32>
      %21 = arith.addf %18, %20 : vector<16x128xf32>
      %cst_20 = arith.constant 0.000000e+00 : f32
      %22 = vector.broadcast %cst_20 : f32 to vector<16x128xf32>
      %23 = arith.maximumf %21, %22 : vector<16x128xf32>
      %24 = arith.truncf %23 : vector<16x128xf32> to vector<16x128xbf16>
      %c0_21 = arith.constant 0 : index
      %c0_22 = arith.constant 0 : index
      %25 = vector.load %arg10[%c0_21, %c0_22] : memref<16x128xbf16, #tpu.memory_space<vmem>>, vector<16x128xbf16>
      tpu.vector_store %arg10[%c0_21, %c0_22], %24 {strides = array<i32>} : memref<16x128xbf16, #tpu.memory_space<vmem>>, vector<16x128xbf16>,
    } else {
    }
    %c0 = arith.constant 0 : index
    %c0_1 = arith.constant 0 : index
    %3 = vector.load %arg10[%c0, %c0_1] : memref<16x128xbf16, #tpu.memory_space<vmem>>, vector<16x128xbf16>
    %c0_2 = arith.constant 0 : index
    %c0_3 = arith.constant 0 : index
    %4 = vector.load %arg7[%c0_2, %c0_3] : memref<128x128xbf16, #tpu.memory_space<vmem>>, vector<128x128xbf16>
    %cst = arith.constant dense<0.000000e+00> : vector<16x128xf32>
    %5 = tpu.matmul %3, %4, %cst {dimension_numbers = #tpu.dot_dimension_numbers<[1], [0], [0], [1], [0, 0, 1, 1], [], []>} : vector<16x128xbf16>, vector<128x128xbf16>, vector<16x128xf32> -> vector<16x128xf32>
    %c0_4 = arith.constant 0 : index
    %c0_5 = arith.constant 0 : index
    %6 = vector.load %arg8[%c0_4, %c0_5] : memref<1x128xf32, #tpu.memory_space<vmem>>, vector<1x128xf32>
    %7 = vector.broadcast %6 : vector<1x128xf32> to vector<16x128xf32>
    %8 = arith.addf %5, %7 : vector<16x128xf32>
    %c0_6 = arith.constant 0 : index
    %c0_7 = arith.constant 0 : index
    %9 = vector.load %arg9[%c0_6, %c0_7] : memref<16x128xf32, #tpu.memory_space<vmem>>, vector<16x128xf32>
    tpu.vector_store %arg9[%c0_6, %c0_7], %8 {strides = array<i32>} : memref<16x128xf32, #tpu.memory_space<vmem>>, vector<16x128xf32>,
    return
  }
  func.func @transform_0(%arg0: i32, %arg1: i32) -> (i32, i32) {
    %c0_i32 = arith.constant 0 : i32
    %c0_i32_0 = arith.constant 0 : i32
    return %arg0, %c0_i32 : i32, i32
  }
  func.func @transform_1(%arg0: i32, %arg1: i32) -> (i32, i32) {
    %c0_i32 = arith.constant 0 : i32
    %c0_i32_0 = arith.constant 0 : i32
    %c0_i32_1 = arith.constant 0 : i32
    return %c0_i32, %c0_i32_0 : i32, i32
  }
  func.func @transform_2(%arg0: i32, %arg1: i32) -> (i32, i32) {
    %c0_i32 = arith.constant 0 : i32
    %c0_i32_0 = arith.constant 0 : i32
    %c0_i32_1 = arith.constant 0 : i32
    return %c0_i32, %c0_i32_0 : i32, i32
  }
  func.func @transform_3(%arg0: i32, %arg1: i32) -> (i32, i32) {
    %c0_i32 = arith.constant 0 : i32
    %c0_i32_0 = arith.constant 0 : i32
    %c0_i32_1 = arith.constant 0 : i32
    return %c0_i32, %c0_i32_0 : i32, i32
  }
  func.func @transform_4(%arg0: i32, %arg1: i32) -> (i32, i32) {
    %c0_i32 = arith.constant 0 : i32
    %c0_i32_0 = arith.constant 0 : i32
    %c0_i32_1 = arith.constant 0 : i32
    return %c0_i32, %c0_i32_0 : i32, i32
  }
  func.func @transform_5(%arg0: i32, %arg1: i32) -> (i32, i32) {
    %c0_i32 = arith.constant 0 : i32
    %c0_i32_0 = arith.constant 0 : i32
    return %c0_i32, %arg1 : i32, i32
  }
  func.func @transform_6(%arg0: i32, %arg1: i32) -> (i32, i32) {
    %c0_i32 = arith.constant 0 : i32
    %c0_i32_0 = arith.constant 0 : i32
    return %c0_i32, %arg1 : i32, i32
  }
  func.func @transform_7(%arg0: i32, %arg1: i32) -> (i32, i32) {
    %c0_i32 = arith.constant 0 : i32
    return %arg0, %arg1 : i32, i32
  }
}

</mosaic_0001>

<bundles_post_ra>
// kernel: gene_expression_decoder.1
= control target key start
LH: loop header
LB: loop body
LE: loop exit
PB: predicated region body
PF: predicated region fallthrough
CT: control target
= control target key end

     0   :  { %v569_v1 = vmov 0.0   ;;  %vm570_vm0 = vmmov 0   ;;  %s740_s0 = inlined_call_operand.vmem [shape: bf16[16,128], index: 0, kind: input, shape index: {}]   ;;  %s741_s1 = inlined_call_operand.vmem [shape: bf16[128,128], index: 1, kind: input, shape index: {}]   ;;  %s742_s2 = inlined_call_operand.vmem [shape: f32[1,128], index: 2, kind: input, shape index: {}]   ;;  %s743_s3 = inlined_call_operand.vmem [shape: bf16[128,128], index: 3, kind: input, shape index: {}]   ;;  %s744_s4 = inlined_call_operand.vmem [shape: f32[1,128], index: 4, kind: input, shape index: {}]   ;;  %s745_s5 = inlined_call_operand.vmem [shape: bf16[128,128], index: 5, kind: input, shape index: {}]   ;;  %s746_s6 = inlined_call_operand.vmem [shape: f32[1,128], index: 6, kind: input, shape index: {}]   ;;  %s747_s7 = inlined_call_operand.hbm [shape: f32[16,128], index: 7, kind: output, shape index: {}]  }
   0x1   :  { %v520_v0 = vld [vmem:[%s741_s1] sm:$0xff]   ;;  %455 = vmatprep.subr.bf16.mxu0 %v569_v1  ;;  %475 = vmatprep.subr.bf16.mxu1 %v569_v1  ;;  %v521_v2 = vld [vmem:[%s741_s1 + $0x8] sm:$0xff]   ;;  %v522_v3 = vld [vmem:[%s741_s1 + $0x10] sm:$0xff]  }
   0x2   :  { %456 = vmatpush3.bf16.msra.mxu0 %v520_v0  ;;  %471 = vmatprep.mubr.msk.bf16.mxu0 %vm570_vm0, %v569_v1  ;;  %v529_v4 = vld [vmem:[%s743_s3] sm:$0xff]   ;;  %v523_v5 = vld [vmem:[%s741_s1 + $0x18] sm:$0xff]   ;;  %v530_v6 = vld [vmem:[%s743_s3 + $0x8] sm:$0xff]  }
   0x3   :  { %457 = vmatprep.subr.bf16.mxu0 %v569_v1  ;;  %491 = vmatprep.mubr.msk.bf16.mxu1 %vm570_vm0, %v569_v1  ;;  %v524_v7 = vld [vmem:[%s741_s1 + $0x20] sm:$0xff]   ;;  %v531_v8 = vld [vmem:[%s743_s3 + $0x10] sm:$0xff]   ;;  %v525_v9 = vld [vmem:[%s741_s1 + $0x28] sm:$0xff]  }
   0x4   :  { %476 = vmatpush3.bf16.msra.mxu1 %v529_v4  ;;  %v532_v10 = vld [vmem:[%s743_s3 + $0x18] sm:$0xff]   ;;  %v526_v11 = vld [vmem:[%s741_s1 + $0x30] sm:$0xff]  }
   0x5   :  { %477 = vmatprep.subr.bf16.mxu1 %v569_v1 }
   0x6   :  { %458 = vmatpush3.bf16.msra.mxu0 %v521_v2 }
   0x7   :  { %459 = vmatprep.subr.bf16.mxu0 %v569_v1 }
   0x8   :  { %478 = vmatpush3.bf16.msra.mxu1 %v530_v6 }
   0x9   :  { %479 = vmatprep.subr.bf16.mxu1 %v569_v1 }
   0xa   :  { %460 = vmatpush3.bf16.msra.mxu0 %v522_v3 }
   0xb   :  { %461 = vmatprep.subr.bf16.mxu0 %v569_v1 }
   0xc   :  { %480 = vmatpush3.bf16.msra.mxu1 %v531_v8 }
   0xd   :  { %481 = vmatprep.subr.bf16.mxu1 %v569_v1 }
   0xe   :  { %462 = vmatpush3.bf16.msra.mxu0 %v523_v5 }
   0xf   :  { %463 = vmatprep.subr.bf16.mxu0 %v569_v1 }
  0x12   :  { %464 = vmatpush3.bf16.msra.mxu0 %v524_v7 }
  0x13   :  { %465 = vmatprep.subr.bf16.mxu0 %v569_v1 }
  0x16   :  { %466 = vmatpush3.bf16.msra.mxu0 %v525_v9 }
  0x17   :  { %12 = vsyncpa [#allocation4], 0  ;;  %467 = vmatprep.subr.bf16.mxu0 %v569_v1  ;;  %482 = vmatpush3.bf16.msra.mxu1 %v532_v10  ;;  %v533_v12 = vld [vmem:[%s743_s3 + $0x20] sm:$0xff]   ;;  %v527_v13 = vld [vmem:[%s741_s1 + $0x38] sm:$0xff]  }
  0x18   :  { %483 = vmatprep.subr.bf16.mxu1 %v569_v1  ;;  %v534_v14 = vld [vmem:[%s743_s3 + $0x28] sm:$0xff]   ;;  %v528_v15 = vld [vmem:[%s740_s0] sm:$0xff]   ;;  %v535_v16 = vld [vmem:[%s743_s3 + $0x30] sm:$0xff]  }
  0x19   :  { %v536_v17 = vld [vmem:[%s743_s3 + $0x38] sm:$0xff]   ;;  %v537_v18 = vld [vmem:[%s745_s5] sm:$0xff]   ;;  %v538_v19 = vld [vmem:[%s745_s5 + $0x8] sm:$0xff]  }
  0x1a   :  { %468 = vmatpush3.bf16.msra.mxu0 %v526_v11  ;;  %v539_v20 = vld [vmem:[%s745_s5 + $0x10] sm:$0xff]   ;;  %v540_v21 = vld [vmem:[%s745_s5 + $0x18] sm:$0xff]   ;;  %v541_v22 = vld [vmem:[%s745_s5 + $0x20] sm:$0xff]  }
  0x1b   :  { %469 = vmatprep.subr.bf16.mxu0 %v569_v1  ;;  %484 = vmatpush3.bf16.msra.mxu1 %v533_v12  ;;  %v542_v23 = vld [vmem:[%s745_s5 + $0x28] sm:$0xff]   ;;  %v400_v24 = vld [vmem:[%s742_s2] ss:$0 sm:$0xff]  ;;  %v543_v32 = vld [vmem:[%s745_s5 + $0x30] sm:$0xff]  }
  0x1c   :  { %485 = vmatprep.subr.bf16.mxu1 %v569_v1  ;;  %v544_v33 = vld [vmem:[%s745_s5 + $0x38] sm:$0xff]   ;;  %v410_v34 = vld [vmem:[%s744_s4] ss:$0 sm:$0xff]  ;;  %s571_s5 = smov [#allocation3]  }
  0x1d   :  { %v419_v44 = vld [vmem:[%s746_s6] ss:$0 sm:$0xff]  ;;  %s389_s30 = sshll.u32 %s571_s5, 4  ;;  %s390_s30 = int_to_ptr.vmem [resolvable:$true] %s389_s30 }
  0x1e   :  { %470 = vmatpush3.bf16.msra.mxu0 %v527_v13  ;;  %s545_s4 = scalar_lea.vmem %s390_s30, 256  ;;  %p550_p1 = scmp.lt.s32.totalorder %s390_s30, %s390_s30 }
  0x1f   :  { %486 = vmatpush3.bf16.msra.mxu1 %v534_v14  ;;  %495 = vmatprep.subr.bf16.mxu0 %v569_v1  ;;  %p546_p0 = scmp.ne.s32.totalorder %s390_s30, %s545_s4  ;;  %p551_p2 = scmp.lt.s32.totalorder %s545_s4, %s545_s4 }
  0x20   :  { %487 = vmatprep.subr.bf16.mxu1 %v569_v1 }
  0x21   :  { %472 = vmatmul.mubr.bf16.vlgmr.msra.gmra.mrb[0].mxu0 %v528_v15  ;;  %p552_p3 = por %p551_p2, %p550_p1 }
  0x22   :  { %511 = vmatprep.mubr.msk.bf16.mxu0 %vm570_vm0, %v569_v1  ;;  %496 = vmatpush3.bf16.msra.mxu0 %v537_v18 }
  0x23   :  { %488 = vmatpush3.bf16.msra.mxu1 %v535_v16  ;;  %497 = vmatprep.subr.bf16.mxu0 %v569_v1  ;;  %p553_p4 = pnand %p552_p3, %p546_p0 }
  0x24   :  { %489 = vmatprep.subr.bf16.mxu1 %v569_v1 }
  0x26   :  { %498 = vmatpush3.bf16.msra.mxu0 %v538_v19 }
  0x27   :  { %490 = vmatpush3.bf16.msra.mxu1 %v536_v17  ;;  %499 = vmatprep.subr.bf16.mxu0 %v569_v1 }
  0x2a   :  { %500 = vmatpush3.bf16.msra.mxu0 %v539_v20 }
  0x2b   :  { %501 = vmatprep.subr.bf16.mxu0 %v569_v1 }
  0x2e   :  { %502 = vmatpush3.bf16.msra.mxu0 %v540_v21 }
  0x2f   :  { %503 = vmatprep.subr.bf16.mxu0 %v569_v1 }
  0x32   :  { %504 = vmatpush3.bf16.msra.mxu0 %v541_v22 }
  0x33   :  { %505 = vmatprep.subr.bf16.mxu0 %v569_v1 }
  0x36   :  { %506 = vmatpush3.bf16.msra.mxu0 %v542_v23 }
  0x37   :  { %507 = vmatprep.subr.bf16.mxu0 %v569_v1 }
  0x3a   :  { %508 = vmatpush3.bf16.msra.mxu0 %v543_v32 }
  0x3b   :  { %509 = vmatprep.subr.bf16.mxu0 %v569_v1 }
  0x3e   :  { %510 = vmatpush3.bf16.msra.mxu0 %v544_v33 }
  0xf4   :  { %v145_v25 = vpop.f32.mrb[0].mxu0 }
  0xf5   :  { %v473_v26 = vpop.f32.mrb[1].mxu0  ;;  %v146_v28 = vadd.f32 %v400_v24, %v145_v25 }
  0xf6   :  { %v148_v27 = vpop.f32.mrb[2].mxu0 }
  0xf7   :  { %v149_v29 = vadd.f32 %v400_v24, %v148_v27  ;;  %v474_v30 = vpop.f32.mrb[3].mxu0 }
  0xf9   :  { %v152_v31 = vpack.c.bf16 %v149_v29, %v146_v28 }
  0xfb   :  { %492 = vmatmul.mubr.bf16.vlgmr.msra.gmra.mrb[0].mxu1 %v152_v31 }
 0x1ce   :  { %v258_v35 = vpop.f32.mrb[0].mxu1 }
 0x1cf   :  { %v259_v36 = vadd.f32 %v410_v34, %v258_v35  ;;  %v493_v37 = vpop.f32.mrb[1].mxu1 }
 0x1d0   :  { %v261_v38 = vpop.f32.mrb[2].mxu1 }
 0x1d1   :  { %v262_v39 = vadd.f32 %v410_v34, %v261_v38  ;;  %v494_v40 = vpop.f32.mrb[3].mxu1  ;;  %v265_v41 = vmax.f32 %v259_v36, 0.0 }
 0x1d3   :  { %v266_v42 = vmax.f32 %v262_v39, 0.0 }
 0x1d5   :  { %v267_v43 = vpack.c.bf16 %v266_v42, %v265_v41 }
 0x1d7   :  { %512 = vmatmul.mubr.bf16.vlgmr.msra.gmra.mrb[4].mxu0 %v267_v43 }
 0x2aa   :  { %v375_v45 = vpop.f32.mrb[4].mxu0 }
 0x2ab   :  { %v376_v46 = vadd.f32 %v419_v44, %v375_v45  ;;  %v513_v47 = vpop.f32.mrb[5].mxu0 }
 0x2ac   :  { %v378_v48 = vpop.f32.mrb[6].mxu0 }
 0x2ad   :  { %382 = vst [vmem:[#allocation3] sm:$0xff] %v376_v46  ;;  %v379_v49 = vadd.f32 %v419_v44, %v378_v48  ;;  %v514_v50 = vpop.f32.mrb[7].mxu0 }
 0x2af   :  { %383 = vst [vmem:[#allocation3 + $0x8] sm:$0xff] %v379_v49 }
 0x2b0   :  { %556 = shalt.err (!%p553_p4)
}
 0x2b1   :  { %s557_s8 = scalar_lea.hbm %s747_s7, 256 }
 0x2b2   :  { %p558_p5 = scmp.ne.s32.totalorder %s747_s7, %s557_s8  ;;  %p561_p6 = scmp.lt.u32.totalorder %s557_s8, %s747_s7 }
 0x2b4   :  { %p563_p7 = pnand %p561_p6, %p558_p5 }
 0x2b6   :  { %566 = shalt.err (!%p563_p7)
}
 0x2b7   :  { %s572_s12 = smov 128   ;;  %s573_s13 = smov 8  }
 0x2b8   :  { %395 = dma.vmem_to_hbm [thread:$0]  %s390_s30, 256, %s747_s7, [#allocation4], %s572_s12, %s572_s12, %s573_s13  }
 0x2b9   :  { %567 = dma.done.wait [#allocation4], 256  }
 0x2ba   :  { %568 = vsyncadd [#allocation4], 4294967040 }
 0x2bb   :  { %399 = vsyncpa [#allocation4], 1 }

</bundles_post_ra>
